<compile_context>
chip_gen: v7x
topology: tpu7x:2x2x1
jax: 0.10.0
libtpu: 0.0.40
codegen_flags: <defaults>
</compile_context>

<pallas_src>
import functools

import jax
import jax.numpy as jnp
from jax.experimental import pallas as pl
from jax.experimental.pallas import tpu as pltpu

X_REP = 2                # repeat factor for flattened x
Y_REP = 3                # repeat factor along dim=1 of y
Z_REPEATS = (2, 1, 3)    # static equivalent of torch.tensor([2, 1, 3])
Z_OUT_ROWS = sum(Z_REPEATS)   # output_size=6
# TODO(synk): Z_REPEATS is baked in statically; if the repeats tensor were a
# runtime input, this would need scalar prefetch + dynamic row indexing.


def _repeat_interleave_kernel(in_ref, out_ref, *, n_xy):
    """Single fused kernel (one input DMA, one output DMA, one store).

    in_ref : (n_xy + 3, W)   rows [0:n_xy)     lane 0 = flat(x) ++ flat(y)
                             rows [n_xy:n_xy+3) = z (lane-padded to W)
    out_ref: (n_xy + 6, W)   rows [0:n_xy)     = xy column broadcast over W lanes
                             rows [n_xy:+6)     = z rows repeated (2, 1, 3)
    """
    w = in_ref.shape[1]

    # x / y: one lane broadcast of the packed column.  The wrapper slices out
    # lanes 0:2 for x and lanes 0:3 for y; the row-major reshape there is
    # exactly the element-interleave.
    xy_rep = jnp.broadcast_to(in_ref[0:n_xy, 0:1], (n_xy, w))

    # z: constant repeat pattern -> static slices + sublane broadcasts.
    zv = in_ref[n_xy:n_xy + len(Z_REPEATS), :]
    z_parts = []
    for src, rep in enumerate(Z_REPEATS):
        z_parts.append(jnp.broadcast_to(zv[src:src + 1, :], (rep, w)))
    z_rep = jnp.concatenate(z_parts, axis=0)                 # (6, W)

    # One full-tile store for the whole fused output slab.
    out_ref[...] = jnp.concatenate([xy_rep, z_rep], axis=0)


@jax.jit
def repeat_interleave_model(x, y, z):
    """Pallas equivalent of Model.forward(x, y, z)."""
    assert x.dtype == y.dtype == z.dtype
    dtype = x.dtype

    zr, zc = z.shape
    assert zr == len(Z_REPEATS), "z must have 3 rows (repeats tensor [2,1,3])"
    r, cy = y.shape
    nx = x.size
    ny = y.size
    n_xy = nx + ny
    w = max(zc, X_REP, Y_REP)

    # --- Pack everything into ONE input slab (wrapper-side layout plumbing) --
    xy_col = jnp.concatenate([x.reshape(-1, 1), y.reshape(-1, 1)], axis=0)
    xy_slab = jnp.pad(xy_col, ((0, 0), (0, w - 1)))           # (n_xy, w)
    z_slab = z if zc == w else jnp.pad(z, ((0, 0), (0, w - zc)))
    in_slab = jnp.concatenate([xy_slab, z_slab], axis=0)      # (n_xy + 3, w)

    out_rows = n_xy + Z_OUT_ROWS
    bytes_accessed = (in_slab.size + out_rows * w) * jnp.dtype(dtype).itemsize

    out_slab = pl.pallas_call(
        functools.partial(_repeat_interleave_kernel, n_xy=n_xy),
        out_shape=jax.ShapeDtypeStruct((out_rows, w), dtype),
        in_specs=[pl.BlockSpec(memory_space=pltpu.MemorySpace.VMEM)],
        out_specs=pl.BlockSpec(memory_space=pltpu.MemorySpace.VMEM),
        cost_estimate=pl.CostEstimate(flops=0, transcendentals=0,
                                      bytes_accessed=int(bytes_accessed)),
    )(in_slab)

    # --- Wrapper-side slicing/reshaping (pure layout, handled by XLA) --------
    out_x = out_slab[:nx, :X_REP].reshape(nx * X_REP)          # (2N,)
    out_y = out_slab[nx:n_xy, :Y_REP].reshape(r, Y_REP * cy)   # (R, 3C)
    out_z = out_slab[n_xy:, :zc]                               # (6, Cz)
    return out_x, out_y, out_z


if __name__ == "__main__":
    key = jax.random.PRNGKey(0)
    kx, ky, kz = jax.random.split(key, 3)
    x = jax.random.normal(kx, (16,), dtype=jnp.float32)
    y = jax.random.normal(ky, (4, 8), dtype=jnp.float32)
    z = jax.random.normal(kz, (3, 8), dtype=jnp.float32)

    out_x, out_y, out_z = repeat_interleave_model(x, y, z)
    jax.block_until_ready((out_x, out_y, out_z))

    # Pure-JAX reference (mirrors torch.repeat_interleave semantics)
    ref_x = jnp.repeat(x.reshape(-1), X_REP)
    ref_y = jnp.repeat(y, Y_REP, axis=1)
    ref_z = jnp.repeat(z, jnp.array(Z_REPEATS), axis=0,
                       total_repeat_length=Z_OUT_ROWS)

    assert out_x.shape == (32,) and out_y.shape == (4, 24) and out_z.shape == (6, 8)
    assert jnp.array_equal(out_x, ref_x)
    assert jnp.array_equal(out_y, ref_y)
    assert jnp.array_equal(out_z, ref_z)

    print("KERNEL_OK")
</pallas_src>

<mosaic_0001>
module attributes {stable_mosaic.version = 11 : i64} {
  func.func @_repeat_interleave_kernel(%arg0: memref<51x8xf32, #tpu.memory_space<vmem>>, %arg1: memref<54x8xf32, #tpu.memory_space<vmem>>) attributes {dimension_semantics = [], scalar_prefetch = 0 : i64, scratch_operands = 0 : i64, tpu.core_type = #tpu.core_type<tc>} {
    %c0 = arith.constant 0 : index
    %c0_0 = arith.constant 0 : index
    %0 = vector.load %arg0[%c0, %c0_0] : memref<51x8xf32, #tpu.memory_space<vmem>>, vector<48x1xf32>
    %1 = vector.shape_cast %0 : vector<48x1xf32> to vector<48x1xf32>
    %2 = vector.broadcast %1 : vector<48x1xf32> to vector<48x8xf32>
    %c48 = arith.constant 48 : index
    %c0_1 = arith.constant 0 : index
    %3 = vector.load %arg0[%c48, %c0_1] : memref<51x8xf32, #tpu.memory_space<vmem>>, vector<3x8xf32>
    %4 = vector.extract_strided_slice %3 {offsets = [0, 0], sizes = [1, 8], strides = [1, 1]} : vector<3x8xf32> to vector<1x8xf32>
    %5 = vector.shape_cast %4 : vector<1x8xf32> to vector<1x8xf32>
    %6 = vector.broadcast %5 : vector<1x8xf32> to vector<2x8xf32>
    %7 = vector.extract_strided_slice %3 {offsets = [1, 0], sizes = [1, 8], strides = [1, 1]} : vector<3x8xf32> to vector<1x8xf32>
    %8 = vector.extract_strided_slice %3 {offsets = [2, 0], sizes = [1, 8], strides = [1, 1]} : vector<3x8xf32> to vector<1x8xf32>
    %9 = vector.shape_cast %8 : vector<1x8xf32> to vector<1x8xf32>
    %10 = vector.broadcast %9 : vector<1x8xf32> to vector<3x8xf32>
    %11 = tpu.concatenate %6, %7, %10 in 0 : vector<2x8xf32>, vector<1x8xf32>, vector<3x8xf32> -> vector<6x8xf32>
    %12 = tpu.concatenate %2, %11 in 0 : vector<48x8xf32>, vector<6x8xf32> -> vector<54x8xf32>
    %c0_2 = arith.constant 0 : index
    %c0_3 = arith.constant 0 : index
    %13 = vector.load %arg1[%c0_2, %c0_3] : memref<54x8xf32, #tpu.memory_space<vmem>>, vector<54x8xf32>
    tpu.vector_store %arg1[%c0_2, %c0_3], %12 {strides = array<i32>} : memref<54x8xf32, #tpu.memory_space<vmem>>, vector<54x8xf32>,
    return
  }
}

</mosaic_0001>

<bundles_post_ra>
// kernel: repeat_interleave_model.1
= control target key start
LH: loop header
LB: loop body
LE: loop exit
PB: predicated region body
PF: predicated region fallthrough
CT: control target
= control target key end

     0   :  { %v45_v0 = vlaneseq  ;;  %v76_v1 = vmov 0   ;;  %vm56_vm0 = vcmask 1041408   ;;  %vm58_vm1 = vcmask 1042432   ;;  %s129_s0 = inlined_call_operand.vmem [shape: f32[51,8], index: 0, kind: input, shape index: {}]   ;;  %s130_s1 = inlined_call_operand.vmem [shape: f32[54,8], index: 1, kind: output, shape index: {}]  }
   0x1   :  { %75 = vset.pattern.permute.xlu1 %v76_v1  ;;  %74 = vset.pattern.permute.xlu0 %v76_v1  ;;  %v10_v2 = vld [vmem:[%s129_s0 + $0x10] sm:$0xff]  ;;  %v8_v4 = vld [vmem:[%s129_s0] sm:$0xff]  ;;  %v11_v6 = vld [vmem:[%s129_s0 + $0x18] sm:$0xff]  ;;  %vm67_vm2 = vcmask 62464   ;;  %vm60_vm3 = vcmask 64512  }
   0x2   :  { %v44_v3 = vld [vmem:[%s129_s0 + $0x30] sm:$0x7]  ;;  %v46_v5 = vshrl.u32 %v45_v0, 7  ;;  %26 = vperm.xlu1 %75, %v10_v2   ;;  %16 = vperm.xlu0 %74, %v8_v4   ;;  %v9_v7 = vld [vmem:[%s129_s0 + $0x8] sm:$0xff]  ;;  %v12_v14 = vld [vmem:[%s129_s0 + $0x20] sm:$0xff] }
   0x3   :  { %v54_v10 = vrot.slane %v44_v3, 7  ;;  %v13_v13 = vld [vmem:[%s129_s0 + $0x28] sm:$0xff] }
   0x4   :  { %v47_v8 = vsub.s32 0, %v46_v5  ;;  %v51_v9 = vsub.s32 2, %v46_v5 }
   0x6   :  { %v48_v11 = vrot.slane %v44_v3, %v47_v8  ;;  %v52_v12 = vrot.slane %v44_v3, %v51_v9  ;;  %31 = vperm.xlu1 %75, %v11_v6   ;;  %21 = vperm.xlu0 %74, %v9_v7  }
   0x8   :  { %v57_v15 = vsel %vm56_vm0, %v48_v11, %v54_v10 }
   0x9   :  { %v59_v16 = vsel %vm58_vm1, %v57_v15, %v52_v12 }
   0xa   :  { %41 = vperm.xlu1 %75, %v13_v13   ;;  %36 = vperm.xlu0 %74, %v12_v14   ;;  %68 = vst.msk [vmem:[%s130_s1 + $0x30] sm:$0x3f] %vm67_vm2, %v59_v16 }
  0x81   :  { %v27_v17 = vpop.permute.xlu1 %26  ;;  %v17_v18 = vpop.permute.xlu0 %16 }
  0x82   :  { %63 = vst.msk [vmem:[%s130_s1 + $0x10] sm:$0xff] %vm60_vm3, %v27_v17  ;;  %61 = vst.msk [vmem:[%s130_s1] sm:$0xff] %vm60_vm3, %v17_v18 }
  0x85   :  { %v32_v19 = vpop.permute.xlu1 %31  ;;  %v22_v20 = vpop.permute.xlu0 %21 }
  0x86   :  { %64 = vst.msk [vmem:[%s130_s1 + $0x18] sm:$0xff] %vm60_vm3, %v32_v19  ;;  %62 = vst.msk [vmem:[%s130_s1 + $0x8] sm:$0xff] %vm60_vm3, %v22_v20 }
  0x89   :  { %v42_v21 = vpop.permute.xlu1 %41  ;;  %v37_v22 = vpop.permute.xlu0 %36 }
  0x8a   :  { %66 = vst.msk [vmem:[%s130_s1 + $0x28] sm:$0xff] %vm60_vm3, %v42_v21  ;;  %65 = vst.msk [vmem:[%s130_s1 + $0x20] sm:$0xff] %vm60_vm3, %v37_v22 }

</bundles_post_ra>
